<compile_context>
chip_gen: v7x
topology: tpu7x:2x2x1
jax: 0.10.0
libtpu: 0.0.40
codegen_flags: <defaults>
</compile_context>

<pallas_src>
import math
import functools

import jax
import jax.numpy as jnp
import numpy as np
from jax import lax
from jax.experimental import pallas as pl
from jax.experimental.pallas import tpu as pltpu


_NEG = -1e30  # large finite negative: masked logits underflow to exactly 0 after exp.


def _lookback_kernel(x_ref, wav_ref, pad_ref,
                     wqT_ref, wkT_ref, wvT_ref, woT_ref,
                     vecs_ref, out_ref, ctx_ref,
                     *, num_heads: int, eps: float,
                     approx_recip: bool, bf16_exp: bool):
    """One grid step = one batch chunk of bb elements.

    x_ref   : (bb, Tq, E) f32       queries (kept f32 for residual / LayerNorm)
    wav_ref : (bb, Tk, E) f32/bf16  keys/values
    pad_ref : (bb, 1, Tk) f32       1.0 = padded key position, 0.0 = attend
    w*T_ref : (E, E) f32/bf16       pre-transposed weights; wqT/bq pre-scaled by 1/sqrt(D)
    vecs_ref: (8, E) f32            rows: bq*scale, bk, bv, bo, gamma, beta, 0, 0
    out_ref : (bb, Tq, E) f32
    ctx_ref : (bb, Tq, E) scratch   per-head attention contexts (MXU dtype)
    """
    bb, tq, e = x_ref.shape
    tk = wav_ref.shape[1]
    d = e // num_heads
    mxu = wqT_ref.dtype                     # bf16 under fast_math, else f32

    vecs = vecs_ref[...]
    bq, bk, bv, bo = vecs[0:1], vecs[1:2], vecs[2:3], vecs[3:4]
    gamma, beta = vecs[4:5], vecs[5:6]

    x = x_ref[...]                          # (bb, tq, e) f32
    x2 = x.reshape(bb * tq, e)              # leading-dim merge only (tq multiple of 8)
    wav2 = wav_ref[...].reshape(bb * tk, e)

    # Fused QKV projections (PyTorch: y = x @ W^T + b); Q scale is pre-folded.
    q = jnp.dot(x2.astype(mxu), wqT_ref[...], preferred_element_type=jnp.float32) + bq
    k = jnp.dot(wav2.astype(mxu), wkT_ref[...], preferred_element_type=jnp.float32) + bk
    v = jnp.dot(wav2.astype(mxu), wvT_ref[...], preferred_element_type=jnp.float32) + bv

    q3 = q.reshape(bb, tq, e).astype(mxu)
    k3 = k.reshape(bb, tk, e).astype(mxu)
    v3 = v.reshape(bb, tk, e).astype(mxu)

    # Additive key-padding bias built in-kernel from the (bb, 1, tk) flag block.
    bias = pad_ref[...] * jnp.float32(_NEG)          # broadcasts over tq and heads

    # TODO(synk): for large head counts / shapes, move to a head-major layout or a
    # fori_loop / extra grid axis so q3/k3/v3 need not stay live across all heads.
    for h in range(num_heads):
        lo, hi = h * d, (h + 1) * d
        s = jnp.einsum("bqd,bkd->bqk", q3[:, :, lo:hi], k3[:, :, lo:hi],
                       preferred_element_type=jnp.float32)          # (bb, tq, tk)
        s = s + bias

        # Softmax numerator (f32 unless bf16_exp on v6e/v7x); denominator in f32.
        m = jnp.max(s, axis=-1, keepdims=True)
        z = s - m
        if bf16_exp:
            z = z.astype(jnp.bfloat16)
        p = jnp.exp(z)
        denom = jnp.sum(p.astype(jnp.float32), axis=-1, keepdims=True)

        ctx = jnp.einsum("bqk,bkd->bqd", p.astype(mxu), v3[:, :, lo:hi],
                         preferred_element_type=jnp.float32)        # (bb, tq, d)
        # Normalize after PV: (tq, d) multiplies instead of (tq, tk).
        ctx = ctx * pl.reciprocal(denom, approx=approx_recip)
        ctx_ref[:, :, lo:hi] = ctx.astype(ctx_ref.dtype)

    # One E-deep output projection for all heads, plus bias and residual.
    ctx2 = ctx_ref[...].reshape(bb * tq, e)
    y = jnp.dot(ctx2, woT_ref[...], preferred_element_type=jnp.float32) + bo + x2

    # LayerNorm over the embedding dim (always f32).
    mu = jnp.mean(y, axis=-1, keepdims=True)
    cen = y - mu
    var = jnp.mean(cen * cen, axis=-1, keepdims=True)
    out = cen * lax.rsqrt(var + jnp.float32(eps)) * gamma + beta
    out_ref[...] = out.reshape(bb, tq, e)


def _chunk_bytes(bb, tq, tk, e, mxu_bytes):
    """Rough per-chunk VMEM working-set estimate (double-buffered I/O + temporaries)."""
    f32 = 4
    io = 2 * (bb * tq * e * f32 + bb * tk * e * mxu_bytes + bb * tq * e * f32)
    qkv = bb * (tq + 2 * tk) * e * f32
    ctx = bb * tq * e * mxu_bytes
    scores = 4 * bb * tq * tk * f32          # s / p / reduction temporaries (per head, reused)
    weights = 2 * 4 * e * e * mxu_bytes      # four (E,E) weights, double-buffered
    return io + qkv + ctx + scores + weights


def _pick_num_chunks(B, tq, tk, e, mxu_bytes, budget=40 * 2**20):
    """Smallest chunk count >= min(B,4) whose chunk fits the VMEM budget (else bb=1)."""
    target = min(B, 4)   # >=2 pipeline steps per TC on v7x, >=3 steps on v6e when B allows
    for c in range(1, B + 1):
        if B % c != 0 or c < target:
            continue
        if _chunk_bytes(B // c, tq, tk, e, mxu_bytes) <= budget:
            return c
    return B


def lookback_forward(x, wav_feature, key_padding_mask, params, *,
                     num_heads: int, eps: float = 1e-5,
                     fast_math: bool = True, num_batch_chunks=None,
                     bf16_softmax_exp: bool = False):
    """LookBackModule forward: MHA(q=x, k=v=wav_feature) + residual + LayerNorm.

    fast_math:         bf16 MXU operands (native fast path on v5e/v6e/v7x) + approx EUP
                       reciprocal; softmax / LayerNorm stay f32.
    num_batch_chunks:  None = auto (>= min(B,4) grid steps, chunk sized for ~40 MiB VMEM).
    bf16_softmax_exp:  optional v6e/v7x-only micro-opt (bf16 exp on the EUP); keep False
                       on v5e (no bf16 EUP).
    """
    B, Tq, E = x.shape
    _, Tk, _ = wav_feature.shape
    assert E % num_heads == 0
    head_dim = E // num_heads

    mxu_dtype = jnp.bfloat16 if fast_math else jnp.float32
    mxu_bytes = 2 if fast_math else 4

    if num_batch_chunks is None:
        num_batch_chunks = _pick_num_chunks(B, Tq, Tk, E, mxu_bytes)
    assert B % num_batch_chunks == 0
    bb = B // num_batch_chunks

    scale = 1.0 / math.sqrt(head_dim)

    x_f32 = x.astype(jnp.float32)
    wav_in = wav_feature.astype(mxu_dtype)
    pad = key_padding_mask.astype(jnp.float32).reshape(B, 1, Tk)

    # Pre-transpose projection weights (no in-kernel transpose); fold softmax scale into Q.
    wqT = (params["wq"].T * scale).astype(mxu_dtype)
    wkT = params["wk"].T.astype(mxu_dtype)
    wvT = params["wv"].T.astype(mxu_dtype)
    woT = params["wo"].T.astype(mxu_dtype)

    # Pack the six small (E,) vectors into one (8, E) block: one DMA / one buffer.
    zero = jnp.zeros((E,), jnp.float32)
    vecs = jnp.stack([params["bq"] * scale, params["bk"], params["bv"], params["bo"],
                      params["gamma"], params["beta"], zero, zero]).astype(jnp.float32)

    kernel = functools.partial(_lookback_kernel, num_heads=num_heads, eps=eps,
                               approx_recip=fast_math, bf16_exp=bf16_softmax_exp)

    est = _chunk_bytes(bb, Tq, Tk, E, mxu_bytes)
    # Explicit scoped-VMEM limit: above the 16/32 MiB defaults when needed, but always
    # under v7x's 64 MiB physical VMEM.
    vmem_limit = int(min(60 * 2**20, max(32 * 2**20, 2 * est)))

    w_spec = pl.BlockSpec((E, E), lambda c: (0, 0))

    out = pl.pallas_call(
        kernel,
        out_shape=jax.ShapeDtypeStruct((B, Tq, E), jnp.float32),
        grid=(num_batch_chunks,),
        in_specs=[
            pl.BlockSpec((bb, Tq, E), lambda c: (c, 0, 0)),   # x
            pl.BlockSpec((bb, Tk, E), lambda c: (c, 0, 0)),   # wav_feature
            pl.BlockSpec((bb, 1, Tk), lambda c: (c, 0, 0)),   # key padding flags
            w_spec, w_spec, w_spec, w_spec,                   # WqT, WkT, WvT, WoT
            pl.BlockSpec((8, E), lambda c: (0, 0)),           # packed bias/LN vectors
        ],
        out_specs=pl.BlockSpec((bb, Tq, E), lambda c: (c, 0, 0)),
        scratch_shapes=[pltpu.VMEM((bb, Tq, E), mxu_dtype)],  # per-head context buffer
        compiler_params=pltpu.CompilerParams(
            dimension_semantics=("parallel",),
            vmem_limit_bytes=vmem_limit),
    )(x_f32, wav_in, pad, wqT, wkT, wvT, woT, vecs)

    return out


def lookback_reference(x, wav, key_padding_mask, params, *, num_heads, eps=1e-5):
    """Pure-JAX f32 reference matching PyTorch nn.MultiheadAttention (eval) + residual + LN."""
    B, Tq, E = x.shape
    _, Tk, _ = wav.shape
    D = E // num_heads
    q = x @ params["wq"].T + params["bq"]
    k = wav @ params["wk"].T + params["bk"]
    v = wav @ params["wv"].T + params["bv"]
    q = q.reshape(B, Tq, num_heads, D).transpose(0, 2, 1, 3) / math.sqrt(D)
    k = k.reshape(B, Tk, num_heads, D).transpose(0, 2, 1, 3)
    v = v.reshape(B, Tk, num_heads, D).transpose(0, 2, 1, 3)
    s = jnp.einsum("bhqd,bhkd->bhqk", q, k)
    s = jnp.where(key_padding_mask[:, None, None, :], -jnp.inf, s)
    p = jax.nn.softmax(s, axis=-1)
    o = jnp.einsum("bhqk,bhkd->bhqd", p, v).transpose(0, 2, 1, 3).reshape(B, Tq, E)
    o = o @ params["wo"].T + params["bo"]
    y = o + x
    mu = jnp.mean(y, axis=-1, keepdims=True)
    var = jnp.mean((y - mu) ** 2, axis=-1, keepdims=True)
    return (y - mu) / jnp.sqrt(var + eps) * params["gamma"] + params["beta"]


if __name__ == "__main__":
    # Small config consistent with the module: hidden_size=32, num_attention_heads=4.
    B, Tq, Tk, E, H = 2, 8, 16, 32, 4

    key = jax.random.PRNGKey(0)
    keys = jax.random.split(key, 12)

    def xavier(k, shape):
        fan_in, fan_out = shape[1], shape[0]
        lim = math.sqrt(6.0 / (fan_in + fan_out))
        return jax.random.uniform(k, shape, jnp.float32, -lim, lim)

    params = {
        "wq": xavier(keys[0], (E, E)),
        "wk": xavier(keys[1], (E, E)),
        "wv": xavier(keys[2], (E, E)),
        "wo": xavier(keys[3], (E, E)),
        "bq": jax.random.normal(keys[4], (E,), jnp.float32) * 0.02,
        "bk": jax.random.normal(keys[5], (E,), jnp.float32) * 0.02,
        "bv": jax.random.normal(keys[6], (E,), jnp.float32) * 0.02,
        "bo": jax.random.normal(keys[7], (E,), jnp.float32) * 0.02,
        "gamma": jnp.ones((E,), jnp.float32),
        "beta": jnp.zeros((E,), jnp.float32),
    }

    x = jax.random.normal(keys[8], (B, Tq, E), jnp.float32)
    wav_feature = jax.random.normal(keys[9], (B, Tk, E), jnp.float32)
    # Padding mask: True = ignore this key position. Pad the tail of batch 1.
    lengths = jnp.array([Tk, Tk - 5], dtype=jnp.int32)
    key_padding_mask = jnp.arange(Tk)[None, :] >= lengths[:, None]   # (B, Tk) bool

    ref = lookback_reference(x, wav_feature, key_padding_mask, params, num_heads=H)

    # 1) Exact-precision path (f32 MXU operands, exact reciprocal), auto chunking (2 steps).
    out_f32 = jax.block_until_ready(
        lookback_forward(x, wav_feature, key_padding_mask, params,
                         num_heads=H, fast_math=False))
    np.testing.assert_allclose(np.asarray(out_f32), np.asarray(ref),
                               rtol=1e-4, atol=1e-4)

    # 2) Default fast path (bf16 MXU operands + approx reciprocal) on all generations.
    out_fast = jax.block_until_ready(
        lookback_forward(x, wav_feature, key_padding_mask, params, num_heads=H))
    np.testing.assert_allclose(np.asarray(out_fast), np.asarray(ref),
                               rtol=5e-2, atol=5e-2)

    # 3) Single-chunk grid (whole batch in one step) still matches.
    out_one = jax.block_until_ready(
        lookback_forward(x, wav_feature, key_padding_mask, params,
                         num_heads=H, fast_math=False, num_batch_chunks=1))
    np.testing.assert_allclose(np.asarray(out_one), np.asarray(ref),
                               rtol=1e-4, atol=1e-4)

    print("KERNEL_OK")
</pallas_src>

<mosaic_0001>
module attributes {stable_mosaic.version = 11 : i64} {
  func.func @_lookback_kernel(%arg0: i32, %arg1: memref<1x8x32xf32, #tpu.memory_space<vmem>>, %arg2: memref<1x16x32xf32, #tpu.memory_space<vmem>>, %arg3: memref<1x1x16xf32, #tpu.memory_space<vmem>>, %arg4: memref<32x32xf32, #tpu.memory_space<vmem>>, %arg5: memref<32x32xf32, #tpu.memory_space<vmem>>, %arg6: memref<32x32xf32, #tpu.memory_space<vmem>>, %arg7: memref<32x32xf32, #tpu.memory_space<vmem>>, %arg8: memref<8x32xf32, #tpu.memory_space<vmem>>, %arg9: memref<1x8x32xf32, #tpu.memory_space<vmem>>, %arg10: memref<1x8x32xf32, #tpu.memory_space<vmem>>) attributes {dimension_semantics = [#tpu.dimension_semantics<parallel>], iteration_bounds = array<i64: 2>, scalar_prefetch = 0 : i64, scratch_operands = 1 : i64, tpu.core_type = #tpu.core_type<tc>, window_params = [{transform_indices = @transform_0, window_bounds = array<i64: 1, 8, 32>}, {transform_indices = @transform_1, window_bounds = array<i64: 1, 16, 32>}, {transform_indices = @transform_2, window_bounds = array<i64: 1, 1, 16>}, {pipeline_mode = #tpu.pipeline_mode<synchronous>, transform_indices = @transform_3, window_bounds = array<i64: 32, 32>}, {pipeline_mode = #tpu.pipeline_mode<synchronous>, transform_indices = @transform_4, window_bounds = array<i64: 32, 32>}, {pipeline_mode = #tpu.pipeline_mode<synchronous>, transform_indices = @transform_5, window_bounds = array<i64: 32, 32>}, {pipeline_mode = #tpu.pipeline_mode<synchronous>, transform_indices = @transform_6, window_bounds = array<i64: 32, 32>}, {pipeline_mode = #tpu.pipeline_mode<synchronous>, transform_indices = @transform_7, window_bounds = array<i64: 8, 32>}, {transform_indices = @transform_8, window_bounds = array<i64: 1, 8, 32>}]} {
    %c0 = arith.constant 0 : index
    %c0_0 = arith.constant 0 : index
    %0 = vector.load %arg8[%c0, %c0_0] : memref<8x32xf32, #tpu.memory_space<vmem>>, vector<8x32xf32>
    %1 = vector.extract_strided_slice %0 {offsets = [0, 0], sizes = [1, 32], strides = [1, 1]} : vector<8x32xf32> to vector<1x32xf32>
    %2 = vector.extract_strided_slice %0 {offsets = [1, 0], sizes = [1, 32], strides = [1, 1]} : vector<8x32xf32> to vector<1x32xf32>
    %3 = vector.extract_strided_slice %0 {offsets = [2, 0], sizes = [1, 32], strides = [1, 1]} : vector<8x32xf32> to vector<1x32xf32>
    %4 = vector.extract_strided_slice %0 {offsets = [3, 0], sizes = [1, 32], strides = [1, 1]} : vector<8x32xf32> to vector<1x32xf32>
    %5 = vector.extract_strided_slice %0 {offsets = [4, 0], sizes = [1, 32], strides = [1, 1]} : vector<8x32xf32> to vector<1x32xf32>
    %6 = vector.extract_strided_slice %0 {offsets = [5, 0], sizes = [1, 32], strides = [1, 1]} : vector<8x32xf32> to vector<1x32xf32>
    %c0_1 = arith.constant 0 : index
    %c0_2 = arith.constant 0 : index
    %c0_3 = arith.constant 0 : index
    %7 = vector.load %arg1[%c0_1, %c0_2, %c0_3] : memref<1x8x32xf32, #tpu.memory_space<vmem>>, vector<1x8x32xf32>
    %8 = vector.shape_cast %7 : vector<1x8x32xf32> to vector<8x32xf32>
    %c0_4 = arith.constant 0 : index
    %c0_5 = arith.constant 0 : index
    %c0_6 = arith.constant 0 : index
    %9 = vector.load %arg2[%c0_4, %c0_5, %c0_6] : memref<1x16x32xf32, #tpu.memory_space<vmem>>, vector<1x16x32xf32>
    %10 = vector.shape_cast %9 : vector<1x16x32xf32> to vector<16x32xf32>
    %c0_7 = arith.constant 0 : index
    %c0_8 = arith.constant 0 : index
    %11 = vector.load %arg4[%c0_7, %c0_8] : memref<32x32xf32, #tpu.memory_space<vmem>>, vector<32x32xf32>
    %cst = arith.constant dense<0.000000e+00> : vector<8x32xf32>
    %12 = tpu.matmul %8, %11, %cst {dimension_numbers = #tpu.dot_dimension_numbers<[1], [0], [0], [1], [0, 0, 1, 1], [], []>} : vector<8x32xf32>, vector<32x32xf32>, vector<8x32xf32> -> vector<8x32xf32>
    %13 = vector.broadcast %1 : vector<1x32xf32> to vector<8x32xf32>
    %14 = arith.addf %12, %13 : vector<8x32xf32>
    %c0_9 = arith.constant 0 : index
    %c0_10 = arith.constant 0 : index
    %15 = vector.load %arg5[%c0_9, %c0_10] : memref<32x32xf32, #tpu.memory_space<vmem>>, vector<32x32xf32>
    %cst_11 = arith.constant dense<0.000000e+00> : vector<16x32xf32>
    %16 = tpu.matmul %10, %15, %cst_11 {dimension_numbers = #tpu.dot_dimension_numbers<[1], [0], [0], [1], [0, 0, 1, 1], [], []>} : vector<16x32xf32>, vector<32x32xf32>, vector<16x32xf32> -> vector<16x32xf32>
    %17 = vector.broadcast %2 : vector<1x32xf32> to vector<16x32xf32>
    %18 = arith.addf %16, %17 : vector<16x32xf32>
    %c0_12 = arith.constant 0 : index
    %c0_13 = arith.constant 0 : index
    %19 = vector.load %arg6[%c0_12, %c0_13] : memref<32x32xf32, #tpu.memory_space<vmem>>, vector<32x32xf32>
    %cst_14 = arith.constant dense<0.000000e+00> : vector<16x32xf32>
    %20 = tpu.matmul %10, %19, %cst_14 {dimension_numbers = #tpu.dot_dimension_numbers<[1], [0], [0], [1], [0, 0, 1, 1], [], []>} : vector<16x32xf32>, vector<32x32xf32>, vector<16x32xf32> -> vector<16x32xf32>
    %21 = vector.broadcast %3 : vector<1x32xf32> to vector<16x32xf32>
    %22 = arith.addf %20, %21 : vector<16x32xf32>
    %23 = vector.shape_cast %14 : vector<8x32xf32> to vector<1x8x32xf32>
    %24 = vector.shape_cast %18 : vector<16x32xf32> to vector<1x16x32xf32>
    %25 = vector.shape_cast %22 : vector<16x32xf32> to vector<1x16x32xf32>
    %c0_15 = arith.constant 0 : index
    %c0_16 = arith.constant 0 : index
    %c0_17 = arith.constant 0 : index
    %26 = vector.load %arg3[%c0_15, %c0_16, %c0_17] : memref<1x1x16xf32, #tpu.memory_space<vmem>>, vector<1x1x16xf32>
    %cst_18 = arith.constant -1.000000e+30 : f32
    %27 = vector.broadcast %cst_18 : f32 to vector<1x1x16xf32>
    %28 = arith.mulf %26, %27 : vector<1x1x16xf32>
    %29 = vector.extract_strided_slice %23 {offsets = [0, 0, 0], sizes = [1, 8, 8], strides = [1, 1, 1]} : vector<1x8x32xf32> to vector<1x8x8xf32>
    %30 = vector.extract_strided_slice %24 {offsets = [0, 0, 0], sizes = [1, 16, 8], strides = [1, 1, 1]} : vector<1x16x32xf32> to vector<1x16x8xf32>
    "tpu.trace_start"() <{level = 10 : i32, message = "bqd,bkd->bqk"}> : () -> ()
    %cst_19 = arith.constant dense<0.000000e+00> : vector<1x8x16xf32>
    %31 = tpu.matmul %29, %30, %cst_19 {dimension_numbers = #tpu.dot_dimension_numbers<[2], [2], [1], [1], [0, 0, 0, 1, 1, 1], [0], [0]>} : vector<1x8x8xf32>, vector<1x16x8xf32>, vector<1x8x16xf32> -> vector<1x8x16xf32>
    "tpu.trace_stop"() : () -> ()
    %32 = vector.broadcast %28 : vector<1x1x16xf32> to vector<1x8x16xf32>
    %33 = arith.addf %31, %32 : vector<1x8x16xf32>
    %cst_20 = arith.constant dense<0xFF800000> : vector<1x8xf32>
    %34 = vector.multi_reduction <maximumf>, %33, %cst_20 [2] : vector<1x8x16xf32> to vector<1x8xf32>
    %35 = vector.shape_cast %34 : vector<1x8xf32> to vector<1x8x1xf32>
    %36 = vector.broadcast %35 : vector<1x8x1xf32> to vector<1x8x16xf32>
    %37 = arith.subf %33, %36 : vector<1x8x16xf32>
    %38 = math.exp %37 : vector<1x8x16xf32>
    %cst_21 = arith.constant dense<0.000000e+00> : vector<1x8xf32>
    %39 = vector.multi_reduction <add>, %38, %cst_21 [2] : vector<1x8x16xf32> to vector<1x8xf32>
    %40 = vector.shape_cast %39 : vector<1x8xf32> to vector<1x8x1xf32>
    %41 = vector.extract_strided_slice %25 {offsets = [0, 0, 0], sizes = [1, 16, 8], strides = [1, 1, 1]} : vector<1x16x32xf32> to vector<1x16x8xf32>
    "tpu.trace_start"() <{level = 10 : i32, message = "bqk,bkd->bqd"}> : () -> ()
    %cst_22 = arith.constant dense<0.000000e+00> : vector<1x8x8xf32>
    %42 = tpu.matmul %38, %41, %cst_22 {dimension_numbers = #tpu.dot_dimension_numbers<[2], [1], [1], [2], [0, 0, 0, 1, 1, 2], [0], [0]>} : vector<1x8x16xf32>, vector<1x16x8xf32>, vector<1x8x8xf32> -> vector<1x8x8xf32>
    "tpu.trace_stop"() : () -> ()
    %43 = tpu.reciprocal %40 : vector<1x8x1xf32> -> vector<1x8x1xf32>
    %44 = vector.broadcast %43 : vector<1x8x1xf32> to vector<1x8x8xf32>
    %45 = arith.mulf %42, %44 : vector<1x8x8xf32>
    %c0_23 = arith.constant 0 : index
    %c0_24 = arith.constant 0 : index
    %c0_25 = arith.constant 0 : index
    %46 = vector.load %arg10[%c0_23, %c0_24, %c0_25] : memref<1x8x32xf32, #tpu.memory_space<vmem>>, vector<1x8x8xf32>
    tpu.vector_store %arg10[%c0_23, %c0_24, %c0_25], %45 {strides = array<i32>} : memref<1x8x32xf32, #tpu.memory_space<vmem>>, vector<1x8x8xf32>,
    %47 = vector.extract_strided_slice %23 {offsets = [0, 0, 8], sizes = [1, 8, 8], strides = [1, 1, 1]} : vector<1x8x32xf32> to vector<1x8x8xf32>
    %48 = vector.extract_strided_slice %24 {offsets = [0, 0, 8], sizes = [1, 16, 8], strides = [1, 1, 1]} : vector<1x16x32xf32> to vector<1x16x8xf32>
    "tpu.trace_start"() <{level = 10 : i32, message = "bqd,bkd->bqk"}> : () -> ()
    %cst_26 = arith.constant dense<0.000000e+00> : vector<1x8x16xf32>
    %49 = tpu.matmul %47, %48, %cst_26 {dimension_numbers = #tpu.dot_dimension_numbers<[2], [2], [1], [1], [0, 0, 0, 1, 1, 1], [0], [0]>} : vector<1x8x8xf32>, vector<1x16x8xf32>, vector<1x8x16xf32> -> vector<1x8x16xf32>
    "tpu.trace_stop"() : () -> ()
    %50 = vector.broadcast %28 : vector<1x1x16xf32> to vector<1x8x16xf32>
    %51 = arith.addf %49, %50 : vector<1x8x16xf32>
    %cst_27 = arith.constant dense<0xFF800000> : vector<1x8xf32>
    %52 = vector.multi_reduction <maximumf>, %51, %cst_27 [2] : vector<1x8x16xf32> to vector<1x8xf32>
    %53 = vector.shape_cast %52 : vector<1x8xf32> to vector<1x8x1xf32>
    %54 = vector.broadcast %53 : vector<1x8x1xf32> to vector<1x8x16xf32>
    %55 = arith.subf %51, %54 : vector<1x8x16xf32>
    %56 = math.exp %55 : vector<1x8x16xf32>
    %cst_28 = arith.constant dense<0.000000e+00> : vector<1x8xf32>
    %57 = vector.multi_reduction <add>, %56, %cst_28 [2] : vector<1x8x16xf32> to vector<1x8xf32>
    %58 = vector.shape_cast %57 : vector<1x8xf32> to vector<1x8x1xf32>
    %59 = vector.extract_strided_slice %25 {offsets = [0, 0, 8], sizes = [1, 16, 8], strides = [1, 1, 1]} : vector<1x16x32xf32> to vector<1x16x8xf32>
    "tpu.trace_start"() <{level = 10 : i32, message = "bqk,bkd->bqd"}> : () -> ()
    %cst_29 = arith.constant dense<0.000000e+00> : vector<1x8x8xf32>
    %60 = tpu.matmul %56, %59, %cst_29 {dimension_numbers = #tpu.dot_dimension_numbers<[2], [1], [1], [2], [0, 0, 0, 1, 1, 2], [0], [0]>} : vector<1x8x16xf32>, vector<1x16x8xf32>, vector<1x8x8xf32> -> vector<1x8x8xf32>
    "tpu.trace_stop"() : () -> ()
    %61 = tpu.reciprocal %58 : vector<1x8x1xf32> -> vector<1x8x1xf32>
    %62 = vector.broadcast %61 : vector<1x8x1xf32> to vector<1x8x8xf32>
    %63 = arith.mulf %60, %62 : vector<1x8x8xf32>
    %c0_30 = arith.constant 0 : index
    %c0_31 = arith.constant 0 : index
    %c8 = arith.constant 8 : index
    %64 = vector.load %arg10[%c0_30, %c0_31, %c8] : memref<1x8x32xf32, #tpu.memory_space<vmem>>, vector<1x8x8xf32>
    tpu.vector_store %arg10[%c0_30, %c0_31, %c8], %63 {strides = array<i32>} : memref<1x8x32xf32, #tpu.memory_space<vmem>>, vector<1x8x8xf32>,
    %65 = vector.extract_strided_slice %23 {offsets = [0, 0, 16], sizes = [1, 8, 8], strides = [1, 1, 1]} : vector<1x8x32xf32> to vector<1x8x8xf32>
    %66 = vector.extract_strided_slice %24 {offsets = [0, 0, 16], sizes = [1, 16, 8], strides = [1, 1, 1]} : vector<1x16x32xf32> to vector<1x16x8xf32>
    "tpu.trace_start"() <{level = 10 : i32, message = "bqd,bkd->bqk"}> : () -> ()
    %cst_32 = arith.constant dense<0.000000e+00> : vector<1x8x16xf32>
    %67 = tpu.matmul %65, %66, %cst_32 {dimension_numbers = #tpu.dot_dimension_numbers<[2], [2], [1], [1], [0, 0, 0, 1, 1, 1], [0], [0]>} : vector<1x8x8xf32>, vector<1x16x8xf32>, vector<1x8x16xf32> -> vector<1x8x16xf32>
    "tpu.trace_stop"() : () -> ()
    %68 = vector.broadcast %28 : vector<1x1x16xf32> to vector<1x8x16xf32>
    %69 = arith.addf %67, %68 : vector<1x8x16xf32>
    %cst_33 = arith.constant dense<0xFF800000> : vector<1x8xf32>
    %70 = vector.multi_reduction <maximumf>, %69, %cst_33 [2] : vector<1x8x16xf32> to vector<1x8xf32>
    %71 = vector.shape_cast %70 : vector<1x8xf32> to vector<1x8x1xf32>
    %72 = vector.broadcast %71 : vector<1x8x1xf32> to vector<1x8x16xf32>
    %73 = arith.subf %69, %72 : vector<1x8x16xf32>
    %74 = math.exp %73 : vector<1x8x16xf32>
    %cst_34 = arith.constant dense<0.000000e+00> : vector<1x8xf32>
    %75 = vector.multi_reduction <add>, %74, %cst_34 [2] : vector<1x8x16xf32> to vector<1x8xf32>
    %76 = vector.shape_cast %75 : vector<1x8xf32> to vector<1x8x1xf32>
    %77 = vector.extract_strided_slice %25 {offsets = [0, 0, 16], sizes = [1, 16, 8], strides = [1, 1, 1]} : vector<1x16x32xf32> to vector<1x16x8xf32>
    "tpu.trace_start"() <{level = 10 : i32, message = "bqk,bkd->bqd"}> : () -> ()
    %cst_35 = arith.constant dense<0.000000e+00> : vector<1x8x8xf32>
    %78 = tpu.matmul %74, %77, %cst_35 {dimension_numbers = #tpu.dot_dimension_numbers<[2], [1], [1], [2], [0, 0, 0, 1, 1, 2], [0], [0]>} : vector<1x8x16xf32>, vector<1x16x8xf32>, vector<1x8x8xf32> -> vector<1x8x8xf32>
    "tpu.trace_stop"() : () -> ()
    %79 = tpu.reciprocal %76 : vector<1x8x1xf32> -> vector<1x8x1xf32>
    %80 = vector.broadcast %79 : vector<1x8x1xf32> to vector<1x8x8xf32>
    %81 = arith.mulf %78, %80 : vector<1x8x8xf32>
    %c0_36 = arith.constant 0 : index
    %c0_37 = arith.constant 0 : index
    %c16 = arith.constant 16 : index
    %82 = vector.load %arg10[%c0_36, %c0_37, %c16] : memref<1x8x32xf32, #tpu.memory_space<vmem>>, vector<1x8x8xf32>
    tpu.vector_store %arg10[%c0_36, %c0_37, %c16], %81 {strides = array<i32>} : memref<1x8x32xf32, #tpu.memory_space<vmem>>, vector<1x8x8xf32>,
    %83 = vector.extract_strided_slice %23 {offsets = [0, 0, 24], sizes = [1, 8, 8], strides = [1, 1, 1]} : vector<1x8x32xf32> to vector<1x8x8xf32>
    %84 = vector.extract_strided_slice %24 {offsets = [0, 0, 24], sizes = [1, 16, 8], strides = [1, 1, 1]} : vector<1x16x32xf32> to vector<1x16x8xf32>
    "tpu.trace_start"() <{level = 10 : i32, message = "bqd,bkd->bqk"}> : () -> ()
    %cst_38 = arith.constant dense<0.000000e+00> : vector<1x8x16xf32>
    %85 = tpu.matmul %83, %84, %cst_38 {dimension_numbers = #tpu.dot_dimension_numbers<[2], [2], [1], [1], [0, 0, 0, 1, 1, 1], [0], [0]>} : vector<1x8x8xf32>, vector<1x16x8xf32>, vector<1x8x16xf32> -> vector<1x8x16xf32>
    "tpu.trace_stop"() : () -> ()
    %86 = vector.broadcast %28 : vector<1x1x16xf32> to vector<1x8x16xf32>
    %87 = arith.addf %85, %86 : vector<1x8x16xf32>
    %cst_39 = arith.constant dense<0xFF800000> : vector<1x8xf32>
    %88 = vector.multi_reduction <maximumf>, %87, %cst_39 [2] : vector<1x8x16xf32> to vector<1x8xf32>
    %89 = vector.shape_cast %88 : vector<1x8xf32> to vector<1x8x1xf32>
    %90 = vector.broadcast %89 : vector<1x8x1xf32> to vector<1x8x16xf32>
    %91 = arith.subf %87, %90 : vector<1x8x16xf32>
    %92 = math.exp %91 : vector<1x8x16xf32>
    %cst_40 = arith.constant dense<0.000000e+00> : vector<1x8xf32>
    %93 = vector.multi_reduction <add>, %92, %cst_40 [2] : vector<1x8x16xf32> to vector<1x8xf32>
    %94 = vector.shape_cast %93 : vector<1x8xf32> to vector<1x8x1xf32>
    %95 = vector.extract_strided_slice %25 {offsets = [0, 0, 24], sizes = [1, 16, 8], strides = [1, 1, 1]} : vector<1x16x32xf32> to vector<1x16x8xf32>
    "tpu.trace_start"() <{level = 10 : i32, message = "bqk,bkd->bqd"}> : () -> ()
    %cst_41 = arith.constant dense<0.000000e+00> : vector<1x8x8xf32>
    %96 = tpu.matmul %92, %95, %cst_41 {dimension_numbers = #tpu.dot_dimension_numbers<[2], [1], [1], [2], [0, 0, 0, 1, 1, 2], [0], [0]>} : vector<1x8x16xf32>, vector<1x16x8xf32>, vector<1x8x8xf32> -> vector<1x8x8xf32>
    "tpu.trace_stop"() : () -> ()
    %97 = tpu.reciprocal %94 : vector<1x8x1xf32> -> vector<1x8x1xf32>
    %98 = vector.broadcast %97 : vector<1x8x1xf32> to vector<1x8x8xf32>
    %99 = arith.mulf %96, %98 : vector<1x8x8xf32>
    %c0_42 = arith.constant 0 : index
    %c0_43 = arith.constant 0 : index
    %c24 = arith.constant 24 : index
    %100 = vector.load %arg10[%c0_42, %c0_43, %c24] : memref<1x8x32xf32, #tpu.memory_space<vmem>>, vector<1x8x8xf32>
    tpu.vector_store %arg10[%c0_42, %c0_43, %c24], %99 {strides = array<i32>} : memref<1x8x32xf32, #tpu.memory_space<vmem>>, vector<1x8x8xf32>,
    %c0_44 = arith.constant 0 : index
    %c0_45 = arith.constant 0 : index
    %c0_46 = arith.constant 0 : index
    %101 = vector.load %arg10[%c0_44, %c0_45, %c0_46] : memref<1x8x32xf32, #tpu.memory_space<vmem>>, vector<1x8x32xf32>
    %102 = vector.shape_cast %101 : vector<1x8x32xf32> to vector<8x32xf32>
    %c0_47 = arith.constant 0 : index
    %c0_48 = arith.constant 0 : index
    %103 = vector.load %arg7[%c0_47, %c0_48] : memref<32x32xf32, #tpu.memory_space<vmem>>, vector<32x32xf32>
    %cst_49 = arith.constant dense<0.000000e+00> : vector<8x32xf32>
    %104 = tpu.matmul %102, %103, %cst_49 {dimension_numbers = #tpu.dot_dimension_numbers<[1], [0], [0], [1], [0, 0, 1, 1], [], []>} : vector<8x32xf32>, vector<32x32xf32>, vector<8x32xf32> -> vector<8x32xf32>
    %105 = vector.broadcast %4 : vector<1x32xf32> to vector<8x32xf32>
    %106 = arith.addf %104, %105 : vector<8x32xf32>
    %107 = arith.addf %106, %8 : vector<8x32xf32>
    %cst_50 = arith.constant dense<0.000000e+00> : vector<8xf32>
    %108 = vector.multi_reduction <add>, %107, %cst_50 [1] : vector<8x32xf32> to vector<8xf32>
    %109 = vector.shape_cast %108 : vector<8xf32> to vector<8x1xf32>
    %cst_51 = arith.constant 3.200000e+01 : f32
    %110 = vector.broadcast %cst_51 : f32 to vector<8x1xf32>
    %111 = arith.divf %109, %110 : vector<8x1xf32>
    %112 = vector.broadcast %111 : vector<8x1xf32> to vector<8x32xf32>
    %113 = arith.subf %107, %112 : vector<8x32xf32>
    %114 = arith.mulf %113, %113 : vector<8x32xf32>
    %cst_52 = arith.constant dense<0.000000e+00> : vector<8xf32>
    %115 = vector.multi_reduction <add>, %114, %cst_52 [1] : vector<8x32xf32> to vector<8xf32>
    %116 = vector.shape_cast %115 : vector<8xf32> to vector<8x1xf32>
    %cst_53 = arith.constant 3.200000e+01 : f32
    %117 = vector.broadcast %cst_53 : f32 to vector<8x1xf32>
    %118 = arith.divf %116, %117 : vector<8x1xf32>
    %cst_54 = arith.constant 9.99999974E-6 : f32
    %119 = vector.broadcast %cst_54 : f32 to vector<8x1xf32>
    %120 = arith.addf %118, %119 : vector<8x1xf32>
    %121 = math.rsqrt %120 : vector<8x1xf32>
    %122 = vector.broadcast %121 : vector<8x1xf32> to vector<8x32xf32>
    %123 = arith.mulf %113, %122 : vector<8x32xf32>
    %124 = vector.broadcast %5 : vector<1x32xf32> to vector<8x32xf32>
    %125 = arith.mulf %123, %124 : vector<8x32xf32>
    %126 = vector.broadcast %6 : vector<1x32xf32> to vector<8x32xf32>
    %127 = arith.addf %125, %126 : vector<8x32xf32>
    %128 = vector.shape_cast %127 : vector<8x32xf32> to vector<1x8x32xf32>
    %c0_55 = arith.constant 0 : index
    %c0_56 = arith.constant 0 : index
    %c0_57 = arith.constant 0 : index
    %129 = vector.load %arg9[%c0_55, %c0_56, %c0_57] : memref<1x8x32xf32, #tpu.memory_space<vmem>>, vector<1x8x32xf32>
    tpu.vector_store %arg9[%c0_55, %c0_56, %c0_57], %128 {strides = array<i32>} : memref<1x8x32xf32, #tpu.memory_space<vmem>>, vector<1x8x32xf32>,
    return
  }
  func.func @transform_0(%arg0: i32) -> (i32, i32, i32) {
    %c0_i32 = arith.constant 0 : i32
    %c0_i32_0 = arith.constant 0 : i32
    %c0_i32_1 = arith.constant 0 : i32
    return %arg0, %c0_i32, %c0_i32_0 : i32, i32, i32
  }
  func.func @transform_1(%arg0: i32) -> (i32, i32, i32) {
    %c0_i32 = arith.constant 0 : i32
    %c0_i32_0 = arith.constant 0 : i32
    %c0_i32_1 = arith.constant 0 : i32
    return %arg0, %c0_i32, %c0_i32_0 : i32, i32, i32
  }
  func.func @transform_2(%arg0: i32) -> (i32, i32, i32) {
    %c0_i32 = arith.constant 0 : i32
    %c0_i32_0 = arith.constant 0 : i32
    %c0_i32_1 = arith.constant 0 : i32
    return %arg0, %c0_i32, %c0_i32_0 : i32, i32, i32
  }
  func.func @transform_3(%arg0: i32) -> (i32, i32) {
    %c0_i32 = arith.constant 0 : i32
    %c0_i32_0 = arith.constant 0 : i32
    %c0_i32_1 = arith.constant 0 : i32
    return %c0_i32, %c0_i32_0 : i32, i32
  }
  func.func @transform_4(%arg0: i32) -> (i32, i32) {
    %c0_i32 = arith.constant 0 : i32
    %c0_i32_0 = arith.constant 0 : i32
    %c0_i32_1 = arith.constant 0 : i32
    return %c0_i32, %c0_i32_0 : i32, i32
  }
  func.func @transform_5(%arg0: i32) -> (i32, i32) {
    %c0_i32 = arith.constant 0 : i32
    %c0_i32_0 = arith.constant 0 : i32
    %c0_i32_1 = arith.constant 0 : i32
    return %c0_i32, %c0_i32_0 : i32, i32
  }
  func.func @transform_6(%arg0: i32) -> (i32, i32) {
    %c0_i32 = arith.constant 0 : i32
    %c0_i32_0 = arith.constant 0 : i32
    %c0_i32_1 = arith.constant 0 : i32
    return %c0_i32, %c0_i32_0 : i32, i32
  }
  func.func @transform_7(%arg0: i32) -> (i32, i32) {
    %c0_i32 = arith.constant 0 : i32
    %c0_i32_0 = arith.constant 0 : i32
    %c0_i32_1 = arith.constant 0 : i32
    return %c0_i32, %c0_i32_0 : i32, i32
  }
  func.func @transform_8(%arg0: i32) -> (i32, i32, i32) {
    %c0_i32 = arith.constant 0 : i32
    %c0_i32_0 = arith.constant 0 : i32
    %c0_i32_1 = arith.constant 0 : i32
    return %arg0, %c0_i32, %c0_i32_0 : i32, i32, i32
  }
}

</mosaic_0001>

<bundles_post_ra>
// kernel: tpu_custom_call.1
= control target key start
LH: loop header
LB: loop body
LE: loop exit
PB: predicated region body
PF: predicated region fallthrough
CT: control target
= control target key end

     0   :  { %s2872_s0 = inlined_call_operand.hbm [shape: f32[2,8,32], index: 0, kind: input, shape index: {}]   ;;  %s2873_s1 = inlined_call_operand.hbm [shape: f32[2,16,32], index: 1, kind: input, shape index: {}]   ;;  %s2874_s2 = inlined_call_operand.vmem [shape: f32[2,1,16], index: 2, kind: input, shape index: {}]   ;;  %s2875_s3 = inlined_call_operand.hbm [shape: f32[32,32], index: 3, kind: input, shape index: {}]   ;;  %s2876_s4 = inlined_call_operand.hbm [shape: f32[32,32], index: 4, kind: input, shape index: {}]   ;;  %s2877_s5 = inlined_call_operand.hbm [shape: f32[32,32], index: 5, kind: input, shape index: {}]   ;;  %s2878_s6 = inlined_call_operand.hbm [shape: f32[32,32], index: 6, kind: input, shape index: {}]   ;;  %s2879_s7 = inlined_call_operand.vmem [shape: f32[8,32], index: 7, kind: input, shape index: {}]   ;;  %s2880_s8 = inlined_call_operand.hbm [shape: f32[2,8,32], index: 8, kind: output, shape index: {}]  }
   0x1   :  { %2886 = sst [smem:[#allocation21_spill]] %s2872_s0 }
   0x2   :  { %2887 = sst [smem:[#allocation22_spill]] %s2875_s3 }
   0x3   :  { %2888 = sst [smem:[#allocation23_spill]] %s2876_s4 }
   0x4   :  { %2889 = sst [smem:[#allocation24_spill]] %s2877_s5 }
   0x5   :  { %13 = vsyncpa [#allocation4], 0 }
   0x6   :  { %15 = vsyncpa [#allocation4 + $0x1], 0 }
   0x7   :  { %16 = vsyncpa [#allocation7], 0 }
   0x8   :  { %18 = vsyncpa [#allocation7 + $0x1], 0 }
   0x9   :  { %19 = vsyncpa [#allocation10], 0 }
   0xa   :  { %20 = vsyncpa [#allocation13], 0 }
   0xb   :  { %21 = vsyncpa [#allocation5], 0 }
   0xc   :  { %23 = vsyncpa [#allocation5 + $0x1], 0  ;;  %s2382_s27 = smov 0   ;;  %s2384_s28 = smov 0  }
   0xd   :  { %s2386_s29 = smov 0   ;;  %s2388_s30 = smov 0  }
   0xe LB: > { %s2319_s9 = smov [#allocation8]   ;;  %s2403_s11 = sadd.s32 4294967295, %s2317_s30   ;;  %s2317_s30 = sphi %s2388_s30, %s2921_s30   ;;  %s2313_s29 = sphi %s2386_s29, %s2920_s29   ;;  %s2309_s28 = sphi %s2384_s28, %s2919_s28   ;;  %s2305_s27 = sphi %s2382_s27, %s2918_s27  }
   0xf   : > { %s255_s10 = sshll.u32 %s2319_s9, 4  ;;  %p1664_p0 = scmp.ge.s32.totalorder %s2317_s30, 1  ;;  %s2408_s10 = int_to_ptr.vmem [resolvable:$true] %s255_s10 }
  0x10   : > { %p2881_p1 = scmp.eq.s32.totalorder %s2403_s11, 0  ;;  %p243_p2 = scmp.lt.s32.totalorder %s2317_s30, 3 }
  0x11   : > { %s2320_s13 = smov [#allocation9]   ;;  %s2321_s16 = smov [#allocation11]  }
  0x12   : > { %p2410_p3 = pnand %p1664_p0, %p243_p2  ;;  %s268_s14 = sshll.u32 %s2320_s13, 4  ;;  %s2423_s14 = int_to_ptr.vmem [resolvable:$true] %s268_s14 }
  0x13   : > { %s281_s17 = sshll.u32 %s2321_s16, 4  ;;  %s2892_s3 = sld [smem:[#allocation22_spill]]  ;;  %s2425_s17 = int_to_ptr.vmem [resolvable:$true] %s281_s17 }
  0x14   : > { %s2890_s12 = scalar_select %p2410_p3, 1, 0 }
  0x15   : > { %p1934_p5 = pneg %p2410_p3 }
  0x17   : > { %p2419_p6 = pnand %p1934_p5, %p2881_p1 }
  0x19   : > { %s2063_s20 = scalar_lea.hbm %s2892_s3, 512  ;;  %p2435_p8 = pneg %p2419_p6 }
  0x1a   : > { %p2064_p7 = scmp.ne.s32.totalorder %s2892_s3, %s2063_s20  ;;  %p2070_p11 = scmp.lt.u32.totalorder %s2063_s20, %s2892_s3 }
  0x1c   : > { %p2066_p9 = pnand %p2435_p8, %p2064_p7 }
  0x1e   : > { %p2067_p10 = pneg %p2066_p9 }
  0x20   : > { %p2072_p12 = pnand %p2070_p11, %p2067_p10 }
  0x22   : > { %2075 = shalt.err (!%p2072_p12)
}
  0x23   : > { %s2076_s26 = scalar_lea.vmem %s2408_s10, 512  ;;  %p2084_p5 = scmp.lt.s32.totalorder %s2408_s10, %s2408_s10 }
  0x24   : > { %p2077_p13 = scmp.ne.s32.totalorder %s2408_s10, %s2076_s26  ;;  %p2085_p4 = scmp.lt.s32.totalorder %s2076_s26, %s2076_s26 }
  0x26   : > { %p2079_p0 = pnand %p2077_p13, %p2435_p8  ;;  %p2086_p7 = por %p2085_p4, %p2084_p5 }
  0x28   : > { %p2080_p2 = pneg %p2079_p0 }
  0x2a   : > { %p2087_p9 = pnand %p2086_p7, %p2080_p2 }
  0x2c   : > { %2090 = shalt.err (!%p2087_p9)
}
  0x2d   : > { %s2883_s9 = smov 128   ;;  %s2884_s13 = smov 8  }
  0x2e   : > { %1937 = dma.hbm_to_vmem [thread:$0]  (!%p2419_p6), %s2892_s3, 512, %s2408_s10, [#allocation7], %s2883_s9, %s2883_s9, %s2884_s13  }
  0x2f   : > { %s2894_s4 = sld [smem:[#allocation23_spill]] }
  0x35   : > { %s2091_s21 = scalar_lea.hbm %s2894_s4, 512 }
  0x36   : > { %p2092_p4 = scmp.ne.s32.totalorder %s2894_s4, %s2091_s21  ;;  %p2098_p12 = scmp.lt.u32.totalorder %s2091_s21, %s2894_s4 }
  0x38   : > { %p2094_p10 = pnand %p2092_p4, %p2435_p8 }
  0x3a   : > { %p2095_p11 = pneg %p2094_p10 }
  0x3c   : > { %p2100_p13 = pnand %p2098_p12, %p2095_p11 }
  0x3e   : > { %2103 = shalt.err (!%p2100_p13)
}
  0x3f   : > { %s2104_s10 = scalar_lea.vmem %s2423_s14, 512  ;;  %p2112_p7 = scmp.lt.s32.totalorder %s2423_s14, %s2423_s14 }
  0x40   : > { %p2105_p0 = scmp.ne.s32.totalorder %s2423_s14, %s2104_s10  ;;  %p2113_p9 = scmp.lt.s32.totalorder %s2104_s10, %s2104_s10 }
  0x42   : > { %p2107_p2 = pnand %p2105_p0, %p2435_p8  ;;  %p2114_p4 = por %p2113_p9, %p2112_p7 }
  0x44   : > { %p2108_p5 = pneg %p2107_p2 }
  0x46   : > { %p2115_p10 = pnand %p2114_p4, %p2108_p5 }
  0x48   : > { %2118 = shalt.err (!%p2115_p10)
}
  0x49   : > { %1940 = dma.hbm_to_vmem [thread:$0]  (!%p2419_p6), %s2894_s4, 512, %s2423_s14, [#allocation10], %s2883_s9, %s2883_s9, %s2884_s13  }
  0x4a   : > { %s2895_s5 = sld [smem:[#allocation24_spill]] }
  0x50   : > { %s2119_s21 = scalar_lea.hbm %s2895_s5, 512 }
  0x51   : > { %p2120_p11 = scmp.ne.s32.totalorder %s2895_s5, %s2119_s21  ;;  %p2126_p0 = scmp.lt.u32.totalorder %s2119_s21, %s2895_s5 }
  0x53   : > { %p2122_p12 = pnand %p2120_p11, %p2435_p8 }
  0x55   : > { %p2123_p13 = pneg %p2122_p12 }
  0x57   : > { %p2128_p2 = pnand %p2126_p0, %p2123_p13 }
  0x59   : > { %2131 = shalt.err (!%p2128_p2)
}
  0x5a   : > { %s2132_s14 = scalar_lea.vmem %s2425_s17, 512  ;;  %p2140_p4 = scmp.lt.s32.totalorder %s2425_s17, %s2425_s17 }
  0x5b   : > { %p2133_p5 = scmp.ne.s32.totalorder %s2425_s17, %s2132_s14  ;;  %p2141_p10 = scmp.lt.s32.totalorder %s2132_s14, %s2132_s14 }
  0x5d   : > { %p2135_p7 = pnand %p2133_p5, %p2435_p8  ;;  %p2142_p11 = por %p2141_p10, %p2140_p4 }
  0x5f   : > { %p2136_p9 = pneg %p2135_p7 }
  0x61   : > { %p2143_p12 = pnand %p2142_p11, %p2136_p9 }
  0x63   : > { %2146 = shalt.err (!%p2143_p12)
}
  0x64   : > { %1943 = dma.hbm_to_vmem [thread:$0]  (!%p2419_p6), %s2895_s5, 512, %s2425_s17, [#allocation10], %s2883_s9, %s2883_s9, %s2884_s13  }
  0x65   : > { %s2324_s18 = smov [#allocation12]   ;;  %s2147_s22 = scalar_lea.hbm %s2878_s6, 512 }
  0x66   : > { %s294_s19 = sshll.u32 %s2324_s18, 4  ;;  %p2148_p13 = scmp.ne.s32.totalorder %s2878_s6, %s2147_s22  ;;  %s295_s19 = int_to_ptr.vmem [resolvable:$true] %s294_s19 }
  0x67   : > { %p2154_p5 = scmp.lt.u32.totalorder %s2147_s22, %s2878_s6 }
  0x68   : > { %p2150_p0 = pnand %p2148_p13, %p2435_p8 }
  0x6a   : > { %p2151_p2 = pneg %p2150_p0 }
  0x6c   : > { %p2156_p7 = pnand %p2154_p5, %p2151_p2 }
  0x6e   : > { %2159 = shalt.err (!%p2156_p7)
}
  0x6f   : > { %s2160_s17 = scalar_lea.vmem %s295_s19, 512  ;;  %p2168_p11 = scmp.lt.s32.totalorder %s295_s19, %s295_s19 }
  0x70   : > { %p2161_p9 = scmp.ne.s32.totalorder %s295_s19, %s2160_s17  ;;  %p2169_p12 = scmp.lt.s32.totalorder %s2160_s17, %s2160_s17 }
  0x72   : > { %p2163_p4 = pnand %p2161_p9, %p2435_p8  ;;  %p2170_p1 = por %p2169_p12, %p2168_p11 }
  0x74   : > { %p2164_p10 = pneg %p2163_p4 }
  0x76   : > { %p2171_p3 = pnand %p2170_p1, %p2164_p10 }
  0x78   : > { %2174 = shalt.err (!%p2171_p3)
}
  0x79   : > { %1946 = dma.hbm_to_vmem [thread:$0]  (!%p2419_p6), %s2878_s6, 512, %s295_s19, [#allocation13], %s2883_s9, %s2883_s9, %s2884_s13  }
  0x7a   : > { %s1663_s15 = sadd.s32 4294967294, %s2317_s30   ;;  %s2534_s23 = sadd.s32 1, %s2317_s30  }
  0x7b   : > { %s33_s18 = ssub.s32 %s2317_s30, %s2534_s23  ;;  %s36_s20 = sadd.s32 1, %s2313_s29 }
  0x7c   : > { %p34_p1 = scmp.eq.s32.totalorder %s33_s18, 0  ;;  %p43_p3 = scmp.ne.s32.totalorder %s2313_s29, %s2309_s28 }
  0x7d   : > { %p44_p8 = scmp.eq.s32.totalorder %s2317_s30, 0  ;;  %p49_p13 = scmp.ne.s32.totalorder %s2309_s28, %s2305_s27 }
  0x7e   : > { %s2545_s21 = scalar_select %p34_p1, %s2313_s29, %s36_s20  }
  0x7f   : > { %p2547_p0 = por %p44_p8, %p43_p3  ;;  %p2897_p2 = scmp.eq.s32.totalorder %s2403_s11, 0 }
  0x80   : > { %p230_p5 = scmp.eq.s32.totalorder %s2403_s11, 1  ;;  %p236_p7 = scmp.eq.s32.totalorder %s1663_s15, 1 }
  0x81   : > { %p2553_p6 = por %p2897_p2, %p49_p13  ;;  %p1962_p9 = scmp.lt.s32.totalorder %s2317_s30, 2 }
  0x82   : > { %s2560_s24 = sand.u32 1, %s2313_s29   ;;  %p2562_p4 = por %p230_p5, %p43_p3 }
  0x83   : > { %p2566_p10 = por %p236_p7, %p49_p13  ;;  %s1670_s14 = sshll.u32 %s2560_s24, 3 }
  0x84   : > { %s2899_s25 = scalar_select %p2562_p4, 1, 0 }
  0x85   : > { %s2900_s26 = scalar_select %p2566_p10, 1, 0 }
  0x86   : > { %s1671_s17 = sshll.u32 %s2317_s30, 7  ;;  %s2901_s0 = sld [smem:[#allocation21_spill]] }
  0x87   : > { %s315_s18 = scalar_lea.vmem [#allocation3], %s1670_s14  ;;  %p2581_p11 = pnand %p1962_p9, %p2547_p0 }
  0x88   : > { %s322_s20 = sshll.u32 %s315_s18, 4  ;;  %s1672_s13 = sshll.u32 %s2560_s24, 4  ;;  %s2577_s20 = int_to_ptr.vmem [resolvable:$true] %s322_s20 }
  0x89   : > { %s312_s10 = scalar_lea.sflag [#allocation4], %s2560_s24  ;;  %p2177_p1 = pneg %p2581_p11 }
  0x8c   : > { %s2575_s15 = scalar_lea.hbm %s2901_s0, %s1671_s17  ;;  %s2180_s22 = scalar_lea.hbm %s2901_s0, 256 }
  0x8d   : > { %s2175_s17 = scalar_lea.hbm %s2575_s15, 128  ;;  %p2181_p13 = scmp.lt.u32.totalorder %s2575_s15, %s2901_s0 }
  0x8e   : > { %p2176_p12 = scmp.ne.s32.totalorder %s2575_s15, %s2175_s17  ;;  %p2182_p0 = scmp.lt.u32.totalorder %s2180_s22, %s2175_s17 }
  0x8f   : > { %p2184_p5 = scmp.lt.u32.totalorder %s2175_s17, %s2575_s15 }
  0x90   : > { %p2178_p3 = pnand %p2177_p1, %p2176_p12  ;;  %p2183_p2 = por %p2182_p0, %p2181_p13 }
  0x92   : > { %p2179_p8 = pneg %p2178_p3  ;;  %p2185_p7 = por %p2184_p5, %p2183_p2 }
  0x94   : > { %p2186_p9 = pnand %p2185_p7, %p2179_p8 }
  0x96   : > { %2189 = shalt.err (!%p2186_p9)
}
  0x97   : > { %s2190_s3 = scalar_lea.vmem %s2577_s20, 128  ;;  %s2325_s14 = smov [#allocation3]  }
  0x98   : > { %p2191_p12 = scmp.ne.s32.totalorder %s2577_s20, %s2190_s3  ;;  %s2195_s16 = sshll.u32 %s2325_s14, 4  ;;  %s2196_s16 = int_to_ptr.vmem [resolvable:$false] %s2195_s16 }
  0x99   : > { %s2197_s4 = scalar_lea.vmem %s2196_s16, 256  ;;  %p2198_p4 = scmp.lt.s32.totalorder %s2577_s20, %s2196_s16 }
  0x9a   : > { %p2193_p3 = pnand %p2191_p12, %p2177_p1  ;;  %p2199_p13 = scmp.lt.s32.totalorder %s2197_s4, %s2190_s3 }
  0x9c   : > { %p2194_p10 = pneg %p2193_p3  ;;  %p2200_p0 = por %p2199_p13, %p2198_p4 }
  0x9e   : > { %p2201_p2 = pnand %p2200_p0, %p2194_p10 }
  0xa0   : > { %2204 = shalt.err (!%p2201_p2)
}
  0xa1   : > { %1950 = dma.hbm_to_vmem [thread:$0]  (!%p2581_p11), %s2575_s15, 128, %s2577_s20, %s312_s10  }
  0xa2   : > { %s333_s17 = scalar_lea.vmem [#allocation6], %s1672_s13  ;;  %s1709_s18 = sshll.u32 %s2317_s30, 8 }
  0xa3   : > { %s340_s22 = sshll.u32 %s333_s17, 4  ;;  %s2621_s16 = scalar_lea.hbm %s2873_s1, %s1709_s18  ;;  %s2615_s22 = int_to_ptr.vmem [resolvable:$true] %s340_s22 }
  0xa4   : > { %s2903_s4 = sand.u32 1, %s2317_s30   ;;  %s2205_s5 = scalar_lea.hbm %s2621_s16, 256 }
  0xa5   : > { %s2625_s0 = scalar_lea.sflag [#allocation7], %s2903_s4  ;;  %p2206_p4 = scmp.ne.s32.totalorder %s2621_s16, %s2205_s5 }
  0xa6   : > { %s2210_s15 = scalar_lea.hbm %s2873_s1, 512  ;;  %p2211_p5 = scmp.lt.u32.totalorder %s2621_s16, %s2873_s1 }
  0xa7   : > { %p2208_p10 = pnand %p2206_p4, %p2177_p1  ;;  %p2212_p7 = scmp.lt.u32.totalorder %s2210_s15, %s2205_s5 }
  0xa8   : > { %p2214_p12 = scmp.lt.u32.totalorder %s2205_s5, %s2621_s16 }
  0xa9   : > { %p2209_p8 = pneg %p2208_p10  ;;  %p2213_p9 = por %p2212_p7, %p2211_p5 }
  0xab   : > { %p2215_p3 = por %p2214_p12, %p2213_p9 }
  0xad   : > { %p2216_p13 = pnand %p2215_p3, %p2209_p8 }
  0xaf   : > { %2219 = shalt.err (!%p2216_p13)
}
  0xb0   : > { %s2220_s17 = scalar_lea.vmem %s2615_s22, 256  ;;  %s2326_s18 = smov [#allocation6]  }
  0xb1   : > { %p2221_p0 = scmp.ne.s32.totalorder %s2615_s22, %s2220_s17  ;;  %s2225_s14 = sshll.u32 %s2326_s18, 4  ;;  %s2226_s14 = int_to_ptr.vmem [resolvable:$false] %s2225_s14 }
  0xb2   : > { %s2227_s3 = scalar_lea.vmem %s2226_s14, 512  ;;  %p2228_p10 = scmp.lt.s32.totalorder %s2615_s22, %s2226_s14 }
  0xb3   : > { %p2223_p2 = pnand %p2221_p0, %p2177_p1  ;;  %p2229_p5 = scmp.lt.s32.totalorder %s2227_s3, %s2220_s17 }
  0xb5   : > { %p2224_p4 = pneg %p2223_p2  ;;  %p2230_p7 = por %p2229_p5, %p2228_p10 }
  0xb7   : > { %p2231_p9 = pnand %p2230_p7, %p2224_p4 }
  0xb9   : > { %2234 = shalt.err (!%p2231_p9)
}
  0xba   : > { %s2904_s5 = smov 8   ;;  %s2905_s4 = smov 128  }
  0xbb   : > { %1953 = dma.hbm_to_vmem [thread:$0]  (!%p2581_p11), %s2621_s16, 256, %s2615_s22, %s2625_s0, %s2905_s4, %s2905_s4, %s2904_s5  }
  0xbc   : > { %p2906_p1 = scmp.ne.s32.totalorder %s2890_s12, 0 }
  0xbd   : > { %s2657_s13 = sand.u32 (!%p2906_p1), 1, %s2309_s28  }
  0xbe   : > { %358 = sbr.rel (%p2906_p1) target bundleno = 2839 (0xb17), region = 52  ;;  %s1676_s24 = sshll.u32 (!%p2906_p1), %s2657_s13, 3 }
  0xbf   : > { %s361_s15 = scalar_lea.sflag (!%p2906_p1), [#allocation4], %s2657_s13  ;;  %s2663_s9 = scalar_lea.vmem (!%p2906_p1), [#allocation3], %s1676_s24 }
  0xc5   : > { %2280 = dma.done.wait (%p2553_p6), %s361_s15, 128  }
  0xc6   : > { %2282 = vsyncadd (%p2553_p6), %s361_s15, 4294967168  ;;  %s369_s0 = sand.u32 1, %s2403_s11   ;;  %s1677_s12 = sshll.u32 %s2657_s13, 4 }
  0xc7   : > { %s370_s22 = scalar_lea.sflag [#allocation7], %s369_s0  ;;  %s2671_s16 = scalar_lea.vmem [#allocation6], %s1677_s12 }
  0xc8   : > { %2284 = dma.done.wait (%p2553_p6), %s370_s22, 256  }
  0xc9   : > { %2286 = vsyncadd (%p2553_p6), %s370_s22, 4294967040  ;;  %p2907_p11 = scmp.eq.s32.totalorder %s2403_s11, 0 }
  0xcb   : > { %2288 = dma.done.wait (%p2907_p11), [#allocation7], 512   ;;  %p2908_p8 = pmov %p2907_p11 }
  0xcd   : > { %2290 = vsyncadd (%p2908_p8), [#allocation7], 4294966784  ;;  %p2909_p12 = pmov %p2908_p8 }
  0xce   : > { %p2910_p3 = pmov %p2908_p8 }
  0xcf   : > { %2292 = dma.done.wait (%p2909_p12), [#allocation10], 1024  }
  0xd0   : > { %2294 = vsyncadd (%p2910_p3), [#allocation10], 4294966272  ;;  %p2911_p13 = pmov %p2910_p3 }
  0xd1   : > { %p2912_p0 = pmov %p2910_p3 }
  0xd2   : > { %2296 = dma.done.wait (%p2911_p13), [#allocation13], 512  }
  0xd3   : > { %2298 = vsyncadd (%p2912_p0), [#allocation13], 4294966784  ;;  %v2327_v0 = vmov 0.0|0.0   ;;  %vm2328_vm0 = vmmov 0   ;;  %v2329_v1 = vmov 0.0   ;;  %vm445_vm1 = vcmask 261120  }
  0xd4   : > { %1856 = vmatprep.subr.bf16.mxu0 %v2327_v0  ;;  %1764 = vmatprep.mubr.msk.f32.mxu0 %vm2328_vm0, %v2329_v1  ;;  %v519_v2 = vld [vmem:[#allocation9] sm:$0xff]  ;;  %v520_v3 = vld [vmem:[#allocation9 + $0x8] sm:$0xff]  ;;  %v521_v4 = vld [vmem:[#allocation9 + $0x10] sm:$0xff]  ;;  %v441_v23 = vlaneseq  ;;  %vm699_vm2 = vcmask 64512   ;;  %s2330_s10 = smov 120   ;;  %p430_p6 = scmp.lt.s32.totalorder %s2403_s11, 1 }
  0xd5   : > { %v1862_v5 = vpack.c.bf16 %v520_v3, %v519_v2  ;;  %v522_v6 = vld [vmem:[#allocation9 + $0x18] sm:$0xff]  ;;  %v435_v7 = vld [vmem:[%s2671_s16] sm:$0xff]  ;;  %v438_v10 = vld [vmem:[#allocation8 + $0x8] sm:$0xff]  ;;  %vm779_vm4 = vcmask 130048   ;;  %s2331_s5 = smov 112   ;;  %s2332_s4 = smov 104  }
  0xd6   : > { %v1866_v8 = vpack.c.bf16 %v522_v6, %v521_v4  ;;  %1775 = vmatprep.mubr.msk.f32.mxu1 %vm445_vm1, %v435_v7  ;;  %v437_v9 = vld [vmem:[#allocation8] sm:$0xff]  ;;  %v439_v11 = vld [vmem:[#allocation8 + $0x10] sm:$0xff]  ;;  %v440_v13 = vld [vmem:[#allocation8 + $0x18] sm:$0xff]  ;;  %v2710_v24 = vshrl.u32 %v441_v23, 7  ;;  %s431_s17 = scalar_select %p430_p6, %s2403_s11, 1  ;;  %vm1043_vm5 = vcmask 130112  }
  0xd7   : > { %1863 = vmatprep.subr.bf16.mxu1 %v1862_v5  ;;  %v1857_v12 = vpack.c.bf16 %v438_v10, %v437_v9  ;;  %v1860_v14 = vpack.c.bf16 %v440_v13, %v439_v11  ;;  %v436_v15 = vld [vmem:[%s2671_s16 + $0x8] sm:$0xff]  ;;  %v608_v17 = vld [vmem:[#allocation11] sm:$0xff]  ;;  %v610_v19 = vld [vmem:[#allocation11 + $0x10] sm:$0xff]  ;;  %s2333_s15 = smov 16   ;;  %vm1221_vm6 = vcmask 195712   ;;  %s2335_s0 = smov 24  }
  0xd8   : > { %1865 = vmatpush3.bf16.msra.mxu1 %v1862_v5  ;;  %v2697_v16 = vld [vmem:[%s2663_s9] sm:$0xff]  ;;  %v609_v18 = vld [vmem:[#allocation11 + $0x8] sm:$0xff]  ;;  %v525_v25 = vsub.s32 1, %v2710_v24  ;;  %v443_v27 = vsub.s32 0, %v2710_v24  ;;  %vm2725_vm3 = vmpackc.low %vm699_vm2, %vm699_vm2  ;;  %s432_s3 = scalar_lea.vmem %s2874_s2, %s431_s17  ;;  %v614_v49 = vsub.s32 2, %v2710_v24  ;;  %s2334_s9 = smov 8  }
  0xd9   : > { %1867 = vmatprep.subr.bf16.mxu1 %v1866_v8  ;;  %1858 = vmatpush3.bf16.msra.mxu0 %v1857_v12  ;;  %v1870_v20 = vpack.c.bf16 %v609_v18, %v608_v17  ;;  %v611_v21 = vld [vmem:[#allocation11 + $0x18] sm:$0xff]  ;;  %v2716_v26 = vld [vmem:[%s2879_s7] sm:$0xff]  ;;  %vm1399_vm7 = vcmask 261312   ;;  %s1706_s12 = sshll.u32 %s2403_s11, 7  ;;  %s429_s22 = scalar_lea.vmem [#allocation14], %s1676_s24 }
  0xda   : > { %1859 = vmatprep.subr.bf16.mxu0 %v2327_v0  ;;  %v1874_v22 = vpack.c.bf16 %v611_v21, %v610_v19  ;;  %v526_v28 = vrot.slane %v2716_v26, %v525_v25  ;;  %v444_v29 = vrot.slane %v2716_v26, %v443_v27  ;;  %v691_v42 = vld [vmem:[%s432_s3] sm:$0x1]  ;;  %v615_v50 = vrot.slane %v2716_v26, %v614_v49  ;;  %s1523_s16 = sshll.u32 %s429_s22, 4  ;;  %s1510_s17 = scalar_lea.sflag [#allocation5], %s2657_s13  ;;  %s2829_s16 = int_to_ptr.vmem [resolvable:$true] %s1523_s16 }
  0xdb   : > { %v692_v43 = vmul.f32 -1e+30, %v691_v42  ;;  %s2235_s18 = scalar_lea.vmem %s2829_s16, 128  ;;  %p2915_p4 = scmp.ne.s32.totalorder %s2899_s25, 0 }
  0xdc   : > { %1869 = vmatpush3.bf16.msra.mxu1 %v1866_v8  ;;  %p2236_p2 = scmp.ne.s32.totalorder %s2829_s16, %s2235_s18  ;;  %s2336_s11 = smov [#allocation14]  }
  0xdd   : > { %1861 = vmatpush3.bf16.msra.mxu0 %v1860_v14  ;;  %1878 = vmatprep.subr.bf16.mxu1 %v2327_v0  ;;  %v2742_v44 = vrot.slane %v692_v43, %v443_v27  ;;  %s2239_s24 = sshll.u32 %s2336_s11, 4  ;;  %s2240_s24 = int_to_ptr.vmem [resolvable:$false] %s2239_s24 }
  0xde   : > { %1871 = vmatprep.subr.bf16.mxu0 %v1870_v20  ;;  %p2237_p10 = pnand %p2236_p2, %p2915_p4  ;;  %s2241_s14 = scalar_lea.vmem %s2240_s24, 256 }
  0xdf   : > { %1776 = vmatmul.mubr.msk.f32.vlgmr.msra.gmra.mrb[0].mxu1 %vm445_vm1, %v436_v15  ;;  %p2242_p7 = scmp.lt.s32.totalorder %s2829_s16, %s2240_s24  ;;  %p2243_p9 = scmp.lt.s32.totalorder %s2241_s14, %s2235_s18 }
  0xe0   : > { %1765 = vmatmul.mubr.msk.f32.vlgmr.msra.gmra.mrb[0].mxu0 %vm445_vm1, %v2697_v16  ;;  %1793 = vmatprep.mubr.msk.f32.mxu1 %vm2328_vm0, %v2329_v1  ;;  %p2238_p5 = pneg %p2237_p10 }
  0xe1   : > { %1786 = vmatprep.mubr.msk.f32.mxu0 %vm445_vm1, %v435_v7  ;;  %1873 = vmatpush3.bf16.msra.mxu0 %v1870_v20  ;;  %p2244_p1 = por %p2243_p9, %p2242_p7 }
  0xe2   : > { %1875 = vmatprep.subr.bf16.mxu0 %v1874_v22 }
  0xe3   : > { %p2245_p11 = pnand %p2244_p1, %p2238_p5 }
  0xe5   : > { %1877 = vmatpush3.bf16.msra.mxu0 %v1874_v22 }
  0xe6   : > { %1889 = vmatprep.subr.bf16.mxu0 %v2327_v0 }
  0xe8   : > { %1787 = vmatmul.mubr.msk.f32.vlgmr.msra.gmra.mrb[2].mxu0 %vm445_vm1, %v436_v15 }
  0xe9   : > { %1814 = vmatprep.mubr.msk.f32.mxu0 %vm2328_vm0, %v2329_v1 }
 0x1b2   : > { %v1777_v30 = vpop.f32.mrb[0].mxu1 }
 0x1b3   : > { %v605_v31 = vadd.f32 %v1777_v30, %v526_v28  ;;  %v599_v32 = vpop.f32.mrb[1].mxu1  ;;  %v515_v33 = vpop.f32.mrb[0].mxu0 }
 0x1b4   : > { %v600_v34 = vadd.f32 %v599_v32, %v526_v28  ;;  %v2721_v35 = vadd.f32 %v515_v33, %v444_v29  ;;  %v1766_v36 = vpop.f32.mrb[1].mxu0 }
 0x1b6   : > { %v1879_v38 = vpack.c.bf16 %v605_v31, %v600_v34  ;;  %865 = vrot.lane.b32.xlu1 %v2721_v35, %s2330_s10  ;;  %v2015_v39 = vpack.i.bf16 %v605_v31, %v600_v34 }
 0x1b8   : > { %1881 = vmatpush3.bf16.xpose.msk.msra.mxu1 %vm2725_vm3, %v1879_v38 }
 0x1b9   : > { %1882 = vmatprep.subr.bf16.mxu1 %v2327_v0 }
 0x1bb   : > { %v1788_v40 = vpop.f32.mrb[2].mxu0 }
 0x1bc   : > { %v682_v41 = vpop.f32.mrb[3].mxu0  ;;  %v688_v51 = vadd.f32 %v1788_v40, %v615_v50 }
 0x1bd   : > { %v683_v52 = vadd.f32 %v682_v41, %v615_v50 }
 0x1bf   : > { %1794 = vmatmul.mubr.msk.f32.vlgmr.msra.gmra.mrb[2].mxu1 %vm699_vm2, %v2721_v35  ;;  %v1883_v53 = vpack.c.bf16 %v688_v51, %v683_v52  ;;  %v2749_v54 = vpack.i.bf16 %v688_v51, %v683_v52 }
 0x1c0   : > { %1800 = vmatprep.mubr.msk.f32.mxu1 %vm2328_vm0, %v2329_v1 }
 0x1c1   : > { %1884 = vmatpush3.bf16.msra.mxu1 %v1883_v53 }
 0x1c2   : > { %1885 = vmatprep.subr.bf16.mxu1 %v2327_v0 }
 0x228   : > { %v866_v5 = vpop.permute.xlu1 %865 }
 0x292   : > { %v775_v45 = vpop.f32.mrb[2].mxu1 }
 0x293   : > { %v776_v46 = vadd.f32 %v775_v45, %v2742_v44  ;;  %v1795_v47 = vpop.f32.mrb[3].mxu1 }
 0x295   : > { %v780_v48 = vsel %vm779_vm4, %v776_v46, -inf }
 0x296   : > { %781 = vmax.xlane.f32.xlu0 %v780_v48 }
 0x2ac   : > { %2016 = vrot.lane.b32.xlu0 %v2015_v39, %s2330_s10 }
 0x2b0   : > { %2021 = vrot.lane.b32.xlu0 %v2749_v54, %s2330_s10  ;;  %s2827_s10 = scalar_lea.hbm %s2880_s8, %s1706_s12 }
 0x2b4   : > { %2026 = vrot.lane.b32.xlu0 %v2015_v39, %s2331_s5 }
 0x2b8   : > { %1045 = vrot.lane.b32.xlu0 %v2721_v35, %s2331_s5 }
 0x323   : > { %v782_v55 = vpop.xlane.xlu0 %781 }
 0x324   : > { %v783_v56 = vsub.f32 %v776_v46, %v782_v55 }
 0x326   : > { %v784_v57 = vmul.f32 1.442695, %v783_v56 }
 0x327   : > { %v2017_v58 = vpop.permute.xlu0 %2016 }
 0x328   : > { %2045 = vpow2.f32 %v784_v57  ;;  %v2019_v62 = vunpack.i.h.bf16 %v2017_v58  ;;  %v2018_v63 = vunpack.i.l.bf16 %v2017_v58 }
 0x32a   : > { %v1886_v4 = vpack.c.bf16 %v2019_v62, %v2018_v63 }
 0x32b   : > { %v2022_v59 = vpop.permute.xlu0 %2021 }
 0x32c   : > { %v2024_v60 = vunpack.i.h.bf16 %v2022_v59  ;;  %v2023_v61 = vunpack.i.l.bf16 %v2022_v59 }
 0x32e   : > { %v1890_v2 = vpack.c.bf16 %v2024_v60, %v2023_v61 }
 0x32f   : > { %v2027_v20 = vpop.permute.xlu0 %2026 }
 0x330   : > { %1891 = vmatpush3.bf16.msra.mxu0 %v1890_v2  ;;  %v2029_v21 = vunpack.i.h.bf16 %v2027_v20  ;;  %v2028_v22 = vunpack.i.l.bf16 %v2027_v20 }
 0x331   : > { %1892 = vmatprep.subr.bf16.mxu0 %v2327_v0 }
 0x332   : > { %v2756_v3 = vpop.eup %2045  ;;  %v1893_v25 = vpack.c.bf16 %v2029_v21, %v2028_v22 }
 0x333   : > { %1801 = vmatmul.mubr.msk.f32.vlgmr.msra.gmra.mrb[4].mxu1 %vm779_vm4, %v2756_v3  ;;  %v1046_v27 = vpop.permute.xlu0 %1045  ;;  %v786_v2 = vsel %vm779_vm4, %v2756_v3, 0.0  ;;  %v1402_v3 = vld [vmem:[#allocation12] sm:$0xff] }
 0x334   : > { %1888 = vmatpush3.bf16.xpose.msk.msra.mxu1 %vm2725_vm3, %v1886_v4  ;;  %1807 = vmatprep.mubr.msk.f32.mxu1 %vm2328_vm0, %v2329_v1 }
 0x335   : > { %1896 = vmatprep.subr.bf16.mxu1 %v2327_v0 }
 0x33b   : > { %1808 = vmatmul.mubr.msk.f32.vlgmr.msra.gmra.mrb[6].mxu1 %vm699_vm2, %v866_v5 }
 0x33c   : > { %1828 = vmatprep.mubr.msk.f32.mxu1 %vm2328_vm0, %v2329_v1 }
 0x406   : > { %v2768_v6 = vpop.f32.mrb[4].mxu1 }
 0x407   : > { %v1802_v7 = vpop.f32.mrb[5].mxu1 }
 0x40e   : > { %v943_v8 = vpop.f32.mrb[6].mxu1 }
 0x40f   : > { %v944_v9 = vadd.f32 %v943_v8, %v2742_v44  ;;  %v1809_v10 = vpop.f32.mrb[7].mxu1 }
 0x411   : > { %v947_v11 = vsel %vm779_vm4, %v944_v9, -inf }
 0x412   : > { %948 = vmax.xlane.f32.xlu1 %v947_v11 }
 0x423   : > { %2031 = vrot.lane.b32.xlu1 %v2749_v54, %s2331_s5 }
 0x427   : > { %2036 = vrot.lane.b32.xlu1 %v2015_v39, %s2332_s4 }
 0x42b   : > { %1223 = vrot.lane.b32.xlu1 %v2721_v35, %s2332_s4 }
 0x49f   : > { %v949_v12 = vpop.xlane.xlu1 %948 }
 0x4a0   : > { %v950_v13 = vsub.f32 %v944_v9, %v949_v12  ;;  %v1403_v12 = vld [vmem:[#allocation12 + $0x8] sm:$0xff] }
 0x4a2   : > { %v951_v14 = vmul.f32 1.442695, %v950_v13  ;;  %v1907_v13 = vpack.c.bf16 %v1403_v12, %v1402_v3 }
 0x4a3   : > { %v2032_v15 = vpop.permute.xlu1 %2031 }
 0x4a4   : > { %2047 = vpow2.f32 %v951_v14  ;;  %v2034_v17 = vunpack.i.h.bf16 %v2032_v15  ;;  %v2033_v18 = vunpack.i.l.bf16 %v2032_v15  ;;  %v1404_v14 = vld [vmem:[#allocation12 + $0x10] sm:$0xff]  ;;  %v1405_v15 = vld [vmem:[#allocation12 + $0x18] sm:$0xff] }
 0x4a6   : > { %v1897_v19 = vpack.c.bf16 %v2034_v17, %v2033_v18  ;;  %v1910_v17 = vpack.c.bf16 %v1405_v15, %v1404_v14 }
 0x4a7   : > { %v2037_v43 = vpop.permute.xlu1 %2036 }
 0x4a8   : > { %1898 = vmatpush3.bf16.msra.mxu1 %v1897_v19  ;;  %v2039_v45 = vunpack.i.h.bf16 %v2037_v43  ;;  %v2038_v46 = vunpack.i.l.bf16 %v2037_v43 }
 0x4a9   : > { %1899 = vmatprep.subr.bf16.mxu1 %v2327_v0 }
 0x4aa   : > { %v1900_v48 = vpack.c.bf16 %v2039_v45, %v2038_v46 }
 0x4ab   : > { %v1224_v49 = vpop.permute.xlu1 %1223 }
 0x4ae   : > { %v2048_v23 = vpop.eup %2047 }
 0x4af   : > { %1815 = vmatmul.mubr.msk.f32.vlgmr.msra.gmra.mrb[4].mxu0 %vm779_vm4, %v2048_v23  ;;  %v953_v34 = vsel %vm779_vm4, %v2048_v23, 0.0  ;;  %v1408_v23 = vsub.s32 3, %v2710_v24 }
 0x4b0   : > { %1895 = vmatpush3.bf16.xpose.msk.msra.mxu0 %vm2725_vm3, %v1893_v25  ;;  %1821 = vmatprep.mubr.msk.f32.mxu0 %vm2328_vm0, %v2329_v1 }
 0x4b1   : > { %1903 = vmatprep.subr.bf16.mxu0 %v2327_v0  ;;  %v1409_v25 = vrot.slane %v2716_v26, %v1408_v23 }
 0x4b7   : > { %1822 = vmatmul.mubr.msk.f32.vlgmr.msra.gmra.mrb[6].mxu0 %vm699_vm2, %v1046_v27 }
 0x4b8   : > { %1842 = vmatprep.mubr.msk.f32.mxu0 %vm2328_vm0, %v2329_v1 }
 0x582   : > { %v1033_v28 = vpop.f32.mrb[4].mxu0 }
 0x583   : > { %v1816_v29 = vpop.f32.mrb[5].mxu0 }
 0x58a   : > { %v1123_v30 = vpop.f32.mrb[6].mxu0 }
 0x58b   : > { %v1124_v31 = vadd.f32 %v1123_v30, %v2742_v44  ;;  %v1823_v32 = vpop.f32.mrb[7].mxu0 }
 0x58d   : > { %v1127_v33 = vsel %vm779_vm4, %v1124_v31, -inf }
 0x58e   : > { %1128 = vmax.xlane.f32.xlu0 %v1127_v33 }
 0x5a4   : > { %2041 = vrot.lane.b32.xlu0 %v2749_v54, %s2332_s4 }
 0x5c3   : > { %954 = vadd.xlane.f32.xlu0 %v953_v34 }
 0x61b   : > { %v1129_v35 = vpop.xlane.xlu0 %1128 }
 0x61c   : > { %v1130_v36 = vsub.f32 %v1124_v31, %v1129_v35 }
 0x61e   : > { %v1131_v38 = vmul.f32 1.442695, %v1130_v36 }
 0x61f   : > { %v2042_v39 = vpop.permute.xlu0 %2041 }
 0x620   : > { %2049 = vpow2.f32 %v1131_v38  ;;  %v2044_v40 = vunpack.i.h.bf16 %v2042_v39  ;;  %v2043_v41 = vunpack.i.l.bf16 %v2042_v39 }
 0x622   : > { %v1904_v42 = vpack.c.bf16 %v2044_v40, %v2043_v41  ;;  %v1500_v40 = vsub.s32 4, %v2710_v24 }
 0x624   : > { %1905 = vmatpush3.bf16.msra.mxu0 %v1904_v42  ;;  %v1501_v41 = vrot.slane %v2716_v26, %v1500_v40 }
 0x625   : > { %1906 = vmatprep.subr.bf16.mxu0 %v2327_v0 }
 0x62a   : > { %v2050_v47 = vpop.eup %2049 }
 0x62b   : > { %1829 = vmatmul.mubr.msk.f32.vlgmr.msra.gmra.mrb[8].mxu1 %vm779_vm4, %v2050_v47  ;;  %v1133_v56 = vsel %vm779_vm4, %v2050_v47, 0.0 }
 0x62c   : > { %1902 = vmatpush3.bf16.xpose.msk.msra.mxu1 %vm2725_vm3, %v1900_v48  ;;  %1835 = vmatprep.mubr.msk.f32.mxu1 %vm2328_vm0, %v2329_v1 }
 0x633   : > { %1836 = vmatmul.mubr.msk.f32.vlgmr.msra.gmra.mrb[10].mxu1 %vm699_vm2, %v1224_v49 }
 0x650   : > { %v955_v63 = vpop.xlane.xlu0 %954 }
 0x6fe   : > { %v1211_v50 = vpop.f32.mrb[8].mxu1 }
 0x6ff   : > { %v1830_v51 = vpop.f32.mrb[9].mxu1 }
 0x706   : > { %v1301_v52 = vpop.f32.mrb[10].mxu1 }
 0x707   : > { %v1302_v53 = vadd.f32 %v1301_v52, %v2742_v44  ;;  %v1837_v54 = vpop.f32.mrb[11].mxu1 }
 0x709   : > { %v1305_v55 = vsel %vm779_vm4, %v1302_v53, -inf }
 0x70a   : > { %1306 = vmax.xlane.f32.xlu1 %v1305_v55 }
 0x70e   : > { %1134 = vadd.xlane.f32.xlu1 %v1133_v56 }
 0x797   : > { %v1307_v37 = vpop.xlane.xlu1 %1306 }
 0x798   : > { %v1308_v57 = vsub.f32 %v1302_v53, %v1307_v37 }
 0x79a   : > { %v1309_v58 = vmul.f32 1.442695, %v1308_v57 }
 0x79b   : > { %v1135_v59 = vpop.xlane.xlu1 %1134 }
 0x79c   : > { %2051 = vpow2.f32 %v1309_v58 }
 0x79d   : > { %2053 = vrcp.f32 %v1135_v59 }
 0x79e   : > { %2055 = vrcp.f32 %v955_v63 }
 0x7a6   : > { %v2052_v60 = vpop.eup %2051 }
 0x7a7   : > { %v2054_v61 = vpop.eup %2053  ;;  %1843 = vmatmul.mubr.msk.f32.vlgmr.msra.gmra.mrb[8].mxu0 %vm779_vm4, %v2052_v60  ;;  %v1311_v62 = vsel %vm779_vm4, %v2052_v60, 0.0 }
 0x7a8   : > { %1312 = vadd.xlane.f32.xlu1 %v1311_v62  ;;  %v1216_v44 = vmul.f32 %v2054_v61, %v1211_v50  ;;  %1853 = vmatprep.mubr.msk.f32.mxu0 %vm2328_vm0, %v2329_v1  ;;  %v2056_v4 = vpop.eup %2055 }
 0x7a9   : > { %v1038_v5 = vmul.f32 %v2056_v4, %v1033_v28  ;;  %1908 = vmatpush3.bf16.msra.mxu0 %v1907_v13 }
 0x7aa   : > { %1218 = vrot.lane.b32.xlu0 %v1216_v44, %s2333_s15  ;;  %1909 = vmatprep.subr.bf16.mxu0 %v2327_v0 }
 0x7ac   : > { %787 = vadd.xlane.f32.xlu1 %v786_v2 }
 0x7ad   : > { %1911 = vmatpush3.bf16.msra.mxu0 %v1910_v17 }
 0x7bd   : > { %1040 = vrot.lane.b32.xlu1 %v1038_v5, %s2334_s9 }
 0x81c   : > { %v1219_v11 = vpop.permute.xlu0 %1218 }
 0x835   : > { %v1313_v7 = vpop.xlane.xlu1 %1312 }
 0x839   : > { %v788_v8 = vpop.xlane.xlu1 %787 }
 0x83a   : > { %2057 = vrcp.f32 %v788_v8 }
 0x83b   : > { %2059 = vrcp.f32 %v1313_v7 }
 0x83d   : > { %v1041_v1 = vpop.permute.xlu1 %1040 }
 0x844   : > { %v2058_v9 = vpop.eup %2057 }
 0x845   : > { %v863_v10 = vmul.f32 %v2058_v9, %v2768_v6  ;;  %v2060_v6 = vpop.eup %2059 }
 0x847   : > { %864 = vst.msk [vmem:[#allocation2] sm:$0xff] %vm699_vm2, %v863_v10 }
 0x848   : > { %1044 = vst.msk [vmem:[#allocation2] sm:$0xff] %vm1043_vm5, %v1041_v1 }
 0x849   : > { %1222 = vst.msk [vmem:[#allocation2] sm:$0xff] %vm1221_vm6, %v1219_v11 }
 0x87a   : > { %v1389_v18 = vpop.f32.mrb[8].mxu0 }
 0x87b   : > { %v1394_v19 = vmul.f32 %v2060_v6, %v1389_v18  ;;  %v1844_v20 = vpop.f32.mrb[9].mxu0 }
 0x87d   : > { %1396 = vrot.lane.b32.xlu1 %v1394_v19, %s2335_s0 }
 0x8ef   : > { %v1397_v21 = vpop.permute.xlu1 %1396 }
 0x8f0   : > { %1400 = vst.msk [vmem:[#allocation2] sm:$0xff] %vm1399_vm7, %v1397_v21 }
 0x8f7   : > { %v1401_v22 = vld [vmem:[#allocation2] sm:$0xff] }
 0x8f8   : > { %1854 = vmatmul.mubr.msk.f32.vlgmr.msra.gmra.mrb[10].mxu0 %vm445_vm1, %v1401_v22 }
 0x9cb   : > { %v1479_v27 = vpop.f32.mrb[10].mxu0 }
 0x9cc   : > { %v1480_v28 = vadd.f32 %v1479_v27, %v1409_v25  ;;  %v1855_v0 = vpop.f32.mrb[11].mxu0 }
 0x9ce   : > { %v1483_v29 = vadd.f32 %v1480_v28, %v2697_v16  ;;  %v1505_v16 = vsub.s32 5, %v2710_v24 }
 0x9d0   : > { %v1484_v30 = vsel %vm445_vm1, %v1483_v29, 0.0  ;;  %v1506_v45 = vrot.slane %v2716_v26, %v1505_v16 }
 0x9d1   : > { %1485 = vadd.xlane.f32.xlu1 %v1484_v30 }
 0xa5e   : > { %v1486_v31 = vpop.xlane.xlu1 %1485 }
 0xa5f   : > { %v1488_v32 = vmul.f32 0.03125, %v1486_v31 }
 0xa61   : > { %v1489_v33 = vsub.f32 %v1483_v29, %v1488_v32 }
 0xa63   : > { %v1490_v34 = vmul.f32 %v1489_v33, %v1489_v33 }
 0xa65   : > { %v1491_v35 = vsel %vm445_vm1, %v1490_v34, 0.0 }
 0xa66   : > { %1492 = vadd.xlane.f32.xlu0 %v1491_v35 }
 0xaf3   : > { %v1493_v36 = vpop.xlane.xlu0 %1492 }
 0xaf4   : > { %v1494_v38 = vmul.f32 0.03125, %v1493_v36 }
 0xaf6   : > { %v1495_v39 = vadd.f32 1e-05, %v1494_v38 }
 0xaf8   : > { %2061 = vrsqrt.f32 %v1495_v39 }
 0xb02   : > { %v2062_v42 = vpop.eup %2061 }
 0xb03   : > { %v1497_v43 = vmul.f32 %v2062_v42, %v1489_v33 }
 0xb05   : > { %v1502_v46 = vmul.f32 %v1501_v41, %v1497_v43 }
 0xb07   : > { %v1507_v47 = vadd.f32 %v1506_v45, %v1502_v46 }
 0xb09   : > { %1508 = vst.msk [vmem:[%s429_s22] sm:$0xff] %vm445_vm1, %v1507_v47 }
 0xb0a   : > { %2248 = shalt.err (!%p2245_p11)
}
 0xb0b   : > { %s2249_s13 = scalar_lea.hbm %s2827_s10, 128  ;;  %s2253_s4 = scalar_lea.hbm %s2880_s8, 256 }
 0xb0c   : > { %p2250_p8 = scmp.ne.s32.totalorder %s2827_s10, %s2249_s13  ;;  %p2254_p13 = scmp.lt.u32.totalorder %s2827_s10, %s2880_s8 }
 0xb0d   : > { %p2255_p0 = scmp.lt.u32.totalorder %s2253_s4, %s2249_s13  ;;  %p2257_p2 = scmp.lt.u32.totalorder %s2249_s13, %s2827_s10 }
 0xb0e   : > { %p2251_p12 = pnand %p2250_p8, %p2915_p4 }
 0xb0f   : > { %p2256_p6 = por %p2255_p0, %p2254_p13 }
 0xb10   : > { %p2252_p3 = pneg %p2251_p12 }
 0xb11   : > { %p2258_p10 = por %p2257_p2, %p2256_p6 }
 0xb13   : > { %p2259_p5 = pnand %p2258_p10, %p2252_p3 }
 0xb15   : > { %2262 = shalt.err (!%p2259_p5)
}
 0xb16   : > { %1932 = dma.vmem_to_hbm [thread:$0]  (%p2915_p4), %s2829_s16, 128, %s2827_s10, %s1510_s17  }
 0xb17 PF: > { %s1535_s0 = sand.u32 1, %s2305_s27   ;;  %p2916_p7 = scmp.ne.s32.totalorder %s2900_s26, 0 }
 0xb18   : > { %p2917_p9 = scmp.ge.s32.totalorder %s2317_s30, 2  ;;  %s1536_s12 = scalar_lea.sflag [#allocation5], %s1535_s0 }
 0xb1a   : > { %p1955_p1 = pnand %p2917_p9, %p2916_p7 }
 0xb1c   : > { %2300 = dma.done.wait (!%p1955_p1), %s1536_s12, 128  }
 0xb1d   : > { %2302 = vsyncadd (!%p1955_p1), %s1536_s12, 4294967168  ;;  %p26_p11 = scmp.ge.s32.totalorder %s2534_s23, 4   ;;  %s2918_s27 = smov %s2309_s28 }
 0xb1e   : > { %s2919_s28 = smov %s2313_s29  ;;  %s2920_s29 = smov %s2545_s21 }
 0xb1f   : > { %s2921_s30 = smov %s2534_s23  ;;  %28 = sbr.rel (!%p26_p11) target bundleno = 14 (0xe), region = 129 }
 0xb26   :  { %1541 = vsyncpa [#allocation4], 1 }
 0xb27   :  { %1543 = vsyncpa [#allocation4 + $0x1], 1 }
 0xb28   :  { %1544 = vsyncpa [#allocation7], 1 }
 0xb29   :  { %1546 = vsyncpa [#allocation7 + $0x1], 1 }
 0xb2a   :  { %1547 = vsyncpa [#allocation10], 1 }
 0xb2b   :  { %1548 = vsyncpa [#allocation13], 1 }
 0xb2c   :  { %1549 = vsyncpa [#allocation5], 1 }
 0xb2d   :  { %1551 = vsyncpa [#allocation5 + $0x1], 1 }

</bundles_post_ra>
